<compile_context>
chip_gen: v5e
topology: v5e:2x2
jax: 0.10.0
libtpu: 0.0.40
codegen_flags: <defaults>
</compile_context>

<pallas_src>
import jax
import jax.numpy as jnp
from jax.experimental import pallas as pl
from jax.experimental.pallas import tpu as pltpu


def encoder_layer_mlp_kernel(x_ref,
                             w11_ref, b11_ref, w12_ref, b12_ref,
                             w21a_ref, w21b_ref, b21_ref, w22_ref, b22_ref,
                             out_ref):
    """One grid step processes Bt batch elements.

    x_ref:    (Bt, S*V, D)  bf16   flattened (samples*vars, features) rows
    w11:      (D, H) bf16   b11: (1, H) f32      -- mlp1 layer 1
    w12:      (H, H) bf16   b12: (1, H) f32      -- mlp1 layer 2
    w21a/b:   (H, H) bf16   b21: (1, H) f32      -- mlp2 layer 1, w21 split by row block
    w22:      (H, H) bf16   b22: (1, H) f32      -- mlp2 layer 2
    out_ref:  (Bt, S, V*D)  f32    lane-dense output slab (D = 2*H)
    """
    Bt, SV, D = x_ref.shape
    _, S, VD = out_ref.shape
    H = D // 2
    V = VD // D
    R = Bt * SV
    f32 = jnp.float32
    bf16 = jnp.bfloat16

    # Leading-dim merge only (SV % 8 == 0): no relayout.
    x2 = x_ref[...].reshape(R, D)

    # ---- mlp1: Linear -> ReLU -> Linear -> ReLU  (f32 accumulate / elementwise) -------
    h = jnp.dot(x2, w11_ref[...], preferred_element_type=f32) + b11_ref[...]
    h = jnp.maximum(h, 0.0)
    h = jnp.dot(h.astype(bf16), w12_ref[...], preferred_element_type=f32) + b12_ref[...]
    m1 = jnp.maximum(h, 0.0)                                    # (R, H) f32

    # ---- max over nb_samples (torch dim=1) --------------------------------------------
    m1_4 = m1.reshape(Bt, S, V, H)
    var_feats = jnp.max(m1_4, axis=1, keepdims=True)            # (Bt, 1, V, H)

    # ---- mlp2 layer 1 WITHOUT materializing concat1:
    #      cat([m1, tile(var_feats)], -1) @ w21 == m1 @ w21[:H] + var_feats @ w21[H:]
    #      (the var_feats half is only V rows per batch, broadcast over samples)
    g_main = jnp.dot(m1.astype(bf16), w21a_ref[...],
                     preferred_element_type=f32)                 # (R, H)
    g_var = jnp.dot(var_feats.reshape(Bt * V, H).astype(bf16), w21b_ref[...],
                    preferred_element_type=f32)                  # (Bt*V, H)
    g = (g_main.reshape(Bt, S, V, H)
         + g_var.reshape(Bt, 1, V, H)                            # broadcast over samples
         + b21_ref[...])
    g = jnp.maximum(g, 0.0)

    # ---- mlp2 layer 2 -------------------------------------------------------------------
    g = jnp.dot(g.reshape(R, H).astype(bf16), w22_ref[...],
                preferred_element_type=f32) + b22_ref[...]
    m2 = jnp.maximum(g, 0.0)                                     # (R, H) f32
    m2_4 = m2.reshape(Bt, S, V, H)

    # ---- max over max_nb_var (torch dim=2), then one lane-dense store -------------------
    pts = jnp.max(m2_4, axis=2, keepdims=True)                   # (Bt, S, 1, H)
    pts_t = jnp.broadcast_to(pts, (Bt, S, V, H))
    y = jnp.concatenate([m2_4, pts_t], axis=-1)                  # (Bt, S, V, D)
    out_ref[...] = y.reshape(Bt, S, VD)


def _pick_batch_block(B, max_bt=8):
    """Largest divisor of B that is <= max_bt while keeping >= 2 grid steps (v7x: 2 TCs)."""
    if B <= 1:
        return 1
    target = max(1, min(max_bt, B // 2))
    for bt in range(target, 0, -1):
        if B % bt == 0:
            return bt
    return 1


def encoder_layer_mlp(x, params, batch_block=None):
    """x: (B, S, V, D) float32.  Returns (B, S, V, D) float32."""
    B, S, V, D = x.shape
    assert D % 2 == 0
    H = D // 2
    w11, b11, w12, b12, w21, b21, w22, b22 = params

    Bt = batch_block if batch_block is not None else _pick_batch_block(B)
    assert B % Bt == 0

    bf16 = jnp.bfloat16
    # Layout-only reshapes in XLA (row-major compatible); bf16 halves DMA bytes.
    x_flat = x.reshape(B, S * V, D).astype(bf16)
    w11b = w11.astype(bf16)
    w12b = w12.astype(bf16)
    w21a = w21[:H, :].astype(bf16)      # rows multiplying mlp1 output channels
    w21bb = w21[H:, :].astype(bf16)     # rows multiplying tiled var_feats channels
    w22b = w22.astype(bf16)

    full = lambda shape: pl.BlockSpec(shape, lambda b: (0,) * len(shape))

    out_flat = pl.pallas_call(
        encoder_layer_mlp_kernel,
        out_shape=jax.ShapeDtypeStruct((B, S, V * D), jnp.float32),
        grid_spec=pltpu.PrefetchScalarGridSpec(
            num_scalar_prefetch=0,
            grid=(B // Bt,),
            in_specs=[
                pl.BlockSpec((Bt, S * V, D), lambda b: (b, 0, 0)),
                full((D, H)), full((1, H)),                 # mlp1 layer 1
                full((H, H)), full((1, H)),                 # mlp1 layer 2
                full((H, H)), full((H, H)), full((1, H)),   # mlp2 layer 1 (split w21)
                full((H, H)), full((1, H)),                 # mlp2 layer 2
            ],
            out_specs=pl.BlockSpec((Bt, S, V * D), lambda b: (b, 0, 0)),
        ),
        compiler_params=pltpu.CompilerParams(
            dimension_semantics=("parallel",)),
    )(x_flat, w11b, b11, w12b, b12, w21a, w21bb, b21, w22b, b22)

    return out_flat.reshape(B, S, V, D)


def reference(x, params):
    """Pure-JAX f32 reference mirroring the PyTorch forward."""
    w11, b11, w12, b12, w21, b21, w22, b22 = params

    def mlp(h, wa, ba, wb, bb):
        h = jnp.maximum(h @ wa + ba, 0.0)
        h = jnp.maximum(h @ wb + bb, 0.0)
        return h

    m1 = mlp(x, w11, b11, w12, b12)                         # (B, S, V, H)
    var_feats = jnp.max(m1, axis=1, keepdims=True)          # (B, 1, V, H)
    var_feats = jnp.broadcast_to(var_feats, m1.shape)
    c1 = jnp.concatenate([m1, var_feats], axis=3)
    m2 = mlp(c1, w21, b21, w22, b22)                        # (B, S, V, H)
    pts_feats = jnp.max(m2, axis=2, keepdims=True)          # (B, S, 1, H)
    pts_feats = jnp.broadcast_to(pts_feats, m2.shape)
    return jnp.concatenate([m2, pts_feats], axis=3)


def init_params(key, d_model):
    H = d_model // 2
    ks = jax.random.split(key, 8)
    scale = 0.1
    w11 = scale * jax.random.normal(ks[0], (d_model, H), jnp.float32)
    b11 = scale * jax.random.normal(ks[1], (1, H), jnp.float32)
    w12 = scale * jax.random.normal(ks[2], (H, H), jnp.float32)
    b12 = scale * jax.random.normal(ks[3], (1, H), jnp.float32)
    w21 = scale * jax.random.normal(ks[4], (d_model, H), jnp.float32)
    b21 = scale * jax.random.normal(ks[5], (1, H), jnp.float32)
    w22 = scale * jax.random.normal(ks[6], (H, H), jnp.float32)
    b22 = scale * jax.random.normal(ks[7], (1, H), jnp.float32)
    return (w11, b11, w12, b12, w21, b21, w22, b22)


if __name__ == "__main__":
    B, nb_samples, max_nb_var, d_model = 2, 8, 4, 32

    key = jax.random.PRNGKey(0)
    kx, kp = jax.random.split(key)
    x = jax.random.normal(kx, (B, nb_samples, max_nb_var, d_model), jnp.float32)
    params = init_params(kp, d_model)

    out = encoder_layer_mlp(x, params)
    out = jax.block_until_ready(out)

    ref = reference(x, params)
    assert out.shape == (B, nb_samples, max_nb_var, d_model)
    max_err = float(jnp.max(jnp.abs(out - ref)))
    # bf16 matmul inputs vs f32 reference -> loose tolerance.
    assert jnp.allclose(out, ref, atol=2e-2, rtol=2e-2), (
        f"mismatch vs reference (max abs err {max_err})")

    print("KERNEL_OK")
</pallas_src>

<mosaic_0001>
module attributes {stable_mosaic.version = 11 : i64} {
  func.func @encoder_layer_mlp_kernel(%arg0: i32, %arg1: memref<1x32x32xbf16, #tpu.memory_space<vmem>>, %arg2: memref<32x16xbf16, #tpu.memory_space<vmem>>, %arg3: memref<1x16xf32, #tpu.memory_space<vmem>>, %arg4: memref<16x16xbf16, #tpu.memory_space<vmem>>, %arg5: memref<1x16xf32, #tpu.memory_space<vmem>>, %arg6: memref<16x16xbf16, #tpu.memory_space<vmem>>, %arg7: memref<16x16xbf16, #tpu.memory_space<vmem>>, %arg8: memref<1x16xf32, #tpu.memory_space<vmem>>, %arg9: memref<16x16xbf16, #tpu.memory_space<vmem>>, %arg10: memref<1x16xf32, #tpu.memory_space<vmem>>, %arg11: memref<1x8x128xf32, #tpu.memory_space<vmem>>) attributes {dimension_semantics = [#tpu.dimension_semantics<parallel>], iteration_bounds = array<i64: 2>, scalar_prefetch = 0 : i64, scratch_operands = 0 : i64, tpu.core_type = #tpu.core_type<tc>, window_params = [{transform_indices = @transform_0, window_bounds = array<i64: 1, 32, 32>}, {pipeline_mode = #tpu.pipeline_mode<synchronous>, transform_indices = @transform_1, window_bounds = array<i64: 32, 16>}, {pipeline_mode = #tpu.pipeline_mode<synchronous>, transform_indices = @transform_2, window_bounds = array<i64: 1, 16>}, {pipeline_mode = #tpu.pipeline_mode<synchronous>, transform_indices = @transform_3, window_bounds = array<i64: 16, 16>}, {pipeline_mode = #tpu.pipeline_mode<synchronous>, transform_indices = @transform_4, window_bounds = array<i64: 1, 16>}, {pipeline_mode = #tpu.pipeline_mode<synchronous>, transform_indices = @transform_5, window_bounds = array<i64: 16, 16>}, {pipeline_mode = #tpu.pipeline_mode<synchronous>, transform_indices = @transform_6, window_bounds = array<i64: 16, 16>}, {pipeline_mode = #tpu.pipeline_mode<synchronous>, transform_indices = @transform_7, window_bounds = array<i64: 1, 16>}, {pipeline_mode = #tpu.pipeline_mode<synchronous>, transform_indices = @transform_8, window_bounds = array<i64: 16, 16>}, {pipeline_mode = #tpu.pipeline_mode<synchronous>, transform_indices = @transform_9, window_bounds = array<i64: 1, 16>}, {transform_indices = @transform_10, window_bounds = array<i64: 1, 8, 128>}]} {
    %c0 = arith.constant 0 : index
    %c0_0 = arith.constant 0 : index
    %c0_1 = arith.constant 0 : index
    %0 = vector.load %arg1[%c0, %c0_0, %c0_1] : memref<1x32x32xbf16, #tpu.memory_space<vmem>>, vector<1x32x32xbf16>
    %1 = vector.shape_cast %0 : vector<1x32x32xbf16> to vector<32x32xbf16>
    %c0_2 = arith.constant 0 : index
    %c0_3 = arith.constant 0 : index
    %2 = vector.load %arg2[%c0_2, %c0_3] : memref<32x16xbf16, #tpu.memory_space<vmem>>, vector<32x16xbf16>
    %cst = arith.constant dense<0.000000e+00> : vector<32x16xf32>
    %3 = tpu.matmul %1, %2, %cst {dimension_numbers = #tpu.dot_dimension_numbers<[1], [0], [0], [1], [0, 0, 1, 1], [], []>} : vector<32x32xbf16>, vector<32x16xbf16>, vector<32x16xf32> -> vector<32x16xf32>
    %c0_4 = arith.constant 0 : index
    %c0_5 = arith.constant 0 : index
    %4 = vector.load %arg3[%c0_4, %c0_5] : memref<1x16xf32, #tpu.memory_space<vmem>>, vector<1x16xf32>
    %5 = vector.broadcast %4 : vector<1x16xf32> to vector<32x16xf32>
    %6 = arith.addf %3, %5 : vector<32x16xf32>
    %cst_6 = arith.constant 0.000000e+00 : f32
    %7 = vector.broadcast %cst_6 : f32 to vector<32x16xf32>
    %8 = arith.maximumf %6, %7 : vector<32x16xf32>
    %9 = arith.truncf %8 : vector<32x16xf32> to vector<32x16xbf16>
    %c0_7 = arith.constant 0 : index
    %c0_8 = arith.constant 0 : index
    %10 = vector.load %arg4[%c0_7, %c0_8] : memref<16x16xbf16, #tpu.memory_space<vmem>>, vector<16x16xbf16>
    %cst_9 = arith.constant dense<0.000000e+00> : vector<32x16xf32>
    %11 = tpu.matmul %9, %10, %cst_9 {dimension_numbers = #tpu.dot_dimension_numbers<[1], [0], [0], [1], [0, 0, 1, 1], [], []>} : vector<32x16xbf16>, vector<16x16xbf16>, vector<32x16xf32> -> vector<32x16xf32>
    %c0_10 = arith.constant 0 : index
    %c0_11 = arith.constant 0 : index
    %12 = vector.load %arg5[%c0_10, %c0_11] : memref<1x16xf32, #tpu.memory_space<vmem>>, vector<1x16xf32>
    %13 = vector.broadcast %12 : vector<1x16xf32> to vector<32x16xf32>
    %14 = arith.addf %11, %13 : vector<32x16xf32>
    %cst_12 = arith.constant 0.000000e+00 : f32
    %15 = vector.broadcast %cst_12 : f32 to vector<32x16xf32>
    %16 = arith.maximumf %14, %15 : vector<32x16xf32>
    %17 = vector.shape_cast %16 : vector<32x16xf32> to vector<1x8x4x16xf32>
    %cst_13 = arith.constant dense<0xFF800000> : vector<1x4x16xf32>
    %18 = vector.multi_reduction <maximumf>, %17, %cst_13 [1] : vector<1x8x4x16xf32> to vector<1x4x16xf32>
    %19 = vector.shape_cast %18 : vector<1x4x16xf32> to vector<1x1x4x16xf32>
    %20 = arith.truncf %16 : vector<32x16xf32> to vector<32x16xbf16>
    %c0_14 = arith.constant 0 : index
    %c0_15 = arith.constant 0 : index
    %21 = vector.load %arg6[%c0_14, %c0_15] : memref<16x16xbf16, #tpu.memory_space<vmem>>, vector<16x16xbf16>
    %cst_16 = arith.constant dense<0.000000e+00> : vector<32x16xf32>
    %22 = tpu.matmul %20, %21, %cst_16 {dimension_numbers = #tpu.dot_dimension_numbers<[1], [0], [0], [1], [0, 0, 1, 1], [], []>} : vector<32x16xbf16>, vector<16x16xbf16>, vector<32x16xf32> -> vector<32x16xf32>
    %23 = vector.shape_cast %19 : vector<1x1x4x16xf32> to vector<4x16xf32>
    %24 = arith.truncf %23 : vector<4x16xf32> to vector<4x16xbf16>
    %c0_17 = arith.constant 0 : index
    %c0_18 = arith.constant 0 : index
    %25 = vector.load %arg7[%c0_17, %c0_18] : memref<16x16xbf16, #tpu.memory_space<vmem>>, vector<16x16xbf16>
    %cst_19 = arith.constant dense<0.000000e+00> : vector<4x16xf32>
    %26 = tpu.matmul %24, %25, %cst_19 {dimension_numbers = #tpu.dot_dimension_numbers<[1], [0], [0], [1], [0, 0, 1, 1], [], []>} : vector<4x16xbf16>, vector<16x16xbf16>, vector<4x16xf32> -> vector<4x16xf32>
    %27 = vector.shape_cast %22 : vector<32x16xf32> to vector<1x8x4x16xf32>
    %28 = vector.shape_cast %26 : vector<4x16xf32> to vector<1x1x4x16xf32>
    %29 = vector.broadcast %28 : vector<1x1x4x16xf32> to vector<1x8x4x16xf32>
    %30 = arith.addf %27, %29 : vector<1x8x4x16xf32>
    %c0_20 = arith.constant 0 : index
    %c0_21 = arith.constant 0 : index
    %31 = vector.load %arg8[%c0_20, %c0_21] : memref<1x16xf32, #tpu.memory_space<vmem>>, vector<1x16xf32>
    %32 = vector.shape_cast %31 : vector<1x16xf32> to vector<1x1x1x16xf32>
    %33 = vector.broadcast %32 : vector<1x1x1x16xf32> to vector<1x8x4x16xf32>
    %34 = arith.addf %30, %33 : vector<1x8x4x16xf32>
    %cst_22 = arith.constant 0.000000e+00 : f32
    %35 = vector.broadcast %cst_22 : f32 to vector<1x8x4x16xf32>
    %36 = arith.maximumf %34, %35 : vector<1x8x4x16xf32>
    %37 = vector.shape_cast %36 : vector<1x8x4x16xf32> to vector<32x16xf32>
    %38 = arith.truncf %37 : vector<32x16xf32> to vector<32x16xbf16>
    %c0_23 = arith.constant 0 : index
    %c0_24 = arith.constant 0 : index
    %39 = vector.load %arg9[%c0_23, %c0_24] : memref<16x16xbf16, #tpu.memory_space<vmem>>, vector<16x16xbf16>
    %cst_25 = arith.constant dense<0.000000e+00> : vector<32x16xf32>
    %40 = tpu.matmul %38, %39, %cst_25 {dimension_numbers = #tpu.dot_dimension_numbers<[1], [0], [0], [1], [0, 0, 1, 1], [], []>} : vector<32x16xbf16>, vector<16x16xbf16>, vector<32x16xf32> -> vector<32x16xf32>
    %c0_26 = arith.constant 0 : index
    %c0_27 = arith.constant 0 : index
    %41 = vector.load %arg10[%c0_26, %c0_27] : memref<1x16xf32, #tpu.memory_space<vmem>>, vector<1x16xf32>
    %42 = vector.broadcast %41 : vector<1x16xf32> to vector<32x16xf32>
    %43 = arith.addf %40, %42 : vector<32x16xf32>
    %cst_28 = arith.constant 0.000000e+00 : f32
    %44 = vector.broadcast %cst_28 : f32 to vector<32x16xf32>
    %45 = arith.maximumf %43, %44 : vector<32x16xf32>
    %46 = vector.shape_cast %45 : vector<32x16xf32> to vector<1x8x4x16xf32>
    %cst_29 = arith.constant dense<0xFF800000> : vector<1x8x16xf32>
    %47 = vector.multi_reduction <maximumf>, %46, %cst_29 [2] : vector<1x8x4x16xf32> to vector<1x8x16xf32>
    %48 = vector.shape_cast %47 : vector<1x8x16xf32> to vector<1x8x1x16xf32>
    %49 = vector.shape_cast %48 : vector<1x8x1x16xf32> to vector<1x8x1x16xf32>
    %50 = vector.broadcast %49 : vector<1x8x1x16xf32> to vector<1x8x4x16xf32>
    %51 = tpu.concatenate %46, %50 in 3 : vector<1x8x4x16xf32>, vector<1x8x4x16xf32> -> vector<1x8x4x32xf32>
    %52 = vector.shape_cast %51 : vector<1x8x4x32xf32> to vector<1x8x128xf32>
    %c0_30 = arith.constant 0 : index
    %c0_31 = arith.constant 0 : index
    %c0_32 = arith.constant 0 : index
    %53 = vector.load %arg11[%c0_30, %c0_31, %c0_32] : memref<1x8x128xf32, #tpu.memory_space<vmem>>, vector<1x8x128xf32>
    tpu.vector_store %arg11[%c0_30, %c0_31, %c0_32], %52 {strides = array<i32>} : memref<1x8x128xf32, #tpu.memory_space<vmem>>, vector<1x8x128xf32>,
    return
  }
  func.func @transform_0(%arg0: i32) -> (i32, i32, i32) {
    %c0_i32 = arith.constant 0 : i32
    %c0_i32_0 = arith.constant 0 : i32
    %c0_i32_1 = arith.constant 0 : i32
    return %arg0, %c0_i32, %c0_i32_0 : i32, i32, i32
  }
  func.func @transform_1(%arg0: i32) -> (i32, i32) {
    %c0_i32 = arith.constant 0 : i32
    %c0_i32_0 = arith.constant 0 : i32
    %c0_i32_1 = arith.constant 0 : i32
    return %c0_i32, %c0_i32_0 : i32, i32
  }
  func.func @transform_2(%arg0: i32) -> (i32, i32) {
    %c0_i32 = arith.constant 0 : i32
    %c0_i32_0 = arith.constant 0 : i32
    %c0_i32_1 = arith.constant 0 : i32
    return %c0_i32, %c0_i32_0 : i32, i32
  }
  func.func @transform_3(%arg0: i32) -> (i32, i32) {
    %c0_i32 = arith.constant 0 : i32
    %c0_i32_0 = arith.constant 0 : i32
    %c0_i32_1 = arith.constant 0 : i32
    return %c0_i32, %c0_i32_0 : i32, i32
  }
  func.func @transform_4(%arg0: i32) -> (i32, i32) {
    %c0_i32 = arith.constant 0 : i32
    %c0_i32_0 = arith.constant 0 : i32
    %c0_i32_1 = arith.constant 0 : i32
    return %c0_i32, %c0_i32_0 : i32, i32
  }
  func.func @transform_5(%arg0: i32) -> (i32, i32) {
    %c0_i32 = arith.constant 0 : i32
    %c0_i32_0 = arith.constant 0 : i32
    %c0_i32_1 = arith.constant 0 : i32
    return %c0_i32, %c0_i32_0 : i32, i32
  }
  func.func @transform_6(%arg0: i32) -> (i32, i32) {
    %c0_i32 = arith.constant 0 : i32
    %c0_i32_0 = arith.constant 0 : i32
    %c0_i32_1 = arith.constant 0 : i32
    return %c0_i32, %c0_i32_0 : i32, i32
  }
  func.func @transform_7(%arg0: i32) -> (i32, i32) {
    %c0_i32 = arith.constant 0 : i32
    %c0_i32_0 = arith.constant 0 : i32
    %c0_i32_1 = arith.constant 0 : i32
    return %c0_i32, %c0_i32_0 : i32, i32
  }
  func.func @transform_8(%arg0: i32) -> (i32, i32) {
    %c0_i32 = arith.constant 0 : i32
    %c0_i32_0 = arith.constant 0 : i32
    %c0_i32_1 = arith.constant 0 : i32
    return %c0_i32, %c0_i32_0 : i32, i32
  }
  func.func @transform_9(%arg0: i32) -> (i32, i32) {
    %c0_i32 = arith.constant 0 : i32
    %c0_i32_0 = arith.constant 0 : i32
    %c0_i32_1 = arith.constant 0 : i32
    return %c0_i32, %c0_i32_0 : i32, i32
  }
  func.func @transform_10(%arg0: i32) -> (i32, i32, i32) {
    %c0_i32 = arith.constant 0 : i32
    %c0_i32_0 = arith.constant 0 : i32
    %c0_i32_1 = arith.constant 0 : i32
    return %arg0, %c0_i32, %c0_i32_0 : i32, i32, i32
  }
}

</mosaic_0001>

<bundles_post_ra>
// kernel: tpu_custom_call.1
= control target key start
LH: loop header
LB: loop body
LE: loop exit
PB: predicated region body
PF: predicated region fallthrough
CT: control target
= control target key end

     0   :  { %s1566_s0 = inlined_call_operand.hbm [shape: bf16[2,32,32], index: 0, kind: input, shape index: {}]   ;;  %s1567_s1 = inlined_call_operand.vmem [shape: bf16[32,16], index: 1, kind: input, shape index: {}]   ;;  %s1568_s2 = inlined_call_operand.vmem [shape: f32[1,16], index: 2, kind: input, shape index: {}]   ;;  %s1569_s3 = inlined_call_operand.vmem [shape: bf16[16,16], index: 3, kind: input, shape index: {}]   ;;  %s1570_s4 = inlined_call_operand.vmem [shape: f32[1,16], index: 4, kind: input, shape index: {}]   ;;  %s1571_s5 = inlined_call_operand.vmem [shape: bf16[16,16], index: 5, kind: input, shape index: {}]   ;;  %s1572_s6 = inlined_call_operand.vmem [shape: bf16[16,16], index: 6, kind: input, shape index: {}]   ;;  %s1573_s7 = inlined_call_operand.vmem [shape: f32[1,16], index: 7, kind: input, shape index: {}]   ;;  %s1574_s8 = inlined_call_operand.hbm [shape: bf16[16,16], index: 8, kind: input, shape index: {}]   ;;  %s1575_s9 = inlined_call_operand.vmem [shape: f32[1,16], index: 9, kind: input, shape index: {}]   ;;  %s1576_s10 = inlined_call_operand.hbm [shape: f32[2,8,128], index: 10, kind: output, shape index: {}]  }
   0x1   :  { %1581 = sst [smem:[#allocation14_spill]] %s1574_s8 }
   0x2   :  { %15 = vsyncpa [#allocation3], 0 }
   0x3   :  { %17 = vsyncpa [#allocation3 + $0x1], 0 }
   0x4   :  { %18 = vsyncpa [#allocation6], 0 }
   0x5   :  { %19 = vsyncpa [#allocation4], 0 }
   0x6   :  { %21 = vsyncpa [#allocation4 + $0x1], 0  ;;  %s1317_s13 = smov 0   ;;  %s1319_s14 = smov 0  }
   0x7   :  { %s1321_s15 = smov 0   ;;  %s1323_s16 = smov 0  }
   0x8 LB: > { %1582 = sst [smem:[#allocation11_spill]] %s1247_s15  ;;  %s1338_s17 = sadd.s32 4294967295, %s1251_s16   ;;  %s1251_s16 = sphi %s1323_s16, %s1599_s16   ;;  %s1247_s15 = sphi %s1321_s15, %s1596_s15   ;;  %s1243_s14 = sphi %s1319_s14, %s1598_s14   ;;  %s1239_s13 = sphi %s1317_s13, %s1597_s13  }
   0x9   : > { %s987_s18 = sadd.s32 4294967294, %s1251_s16   ;;  %p47_p0 = scmp.ne.s32.totalorder %s1243_s14, %s1239_s13 }
   0xa   : > { %p48_p1 = scmp.eq.s32.totalorder %s1338_s17, 0  ;;  %p260_p2 = scmp.eq.s32.totalorder %s1338_s17, 1 }
   0xb   : > { %p266_p3 = scmp.eq.s32.totalorder %s987_s18, 1  ;;  %p988_p5 = scmp.ge.s32.totalorder %s1251_s16, 1 }
   0xc   : > { %p1347_p4 = por %p48_p1, %p47_p0  ;;  %p273_p7 = scmp.lt.s32.totalorder %s1251_s16, 3 }
   0xd   : > { %p1352_p6 = por %p266_p3, %p47_p0  ;;  %s1586_s8 = sld [smem:[#allocation14_spill]] }
   0xe   : > { %p1360_p8 = pnand %p988_p5, %p273_p7  ;;  %s1253_s25 = smov [#allocation5]  }
   0xf   : > { %s1584_s20 = scalar_select %p1352_p6, 1, 0 }
  0x10   : > { %p1060_p9 = pneg %p1360_p8  ;;  %s307_s26 = sshll.u32 %s1253_s25, 4  ;;  %s308_s26 = int_to_ptr.vmem [resolvable:$true] %s307_s26 }
  0x11   : > { %1585 = sst [smem:[#allocation12_spill]] %s1584_s20  ;;  %s1370_s27 = sadd.s32 1, %s1251_s16  }
  0x12   : > { %p1061_p10 = pnand %p1060_p9, %p48_p1  ;;  %s1578_s28 = smov 64  }
  0x13   : > { %s305_s23 = sshll.u32 %s1586_s8, 4  ;;  %s1579_s29 = smov 4   ;;  %s306_s23 = int_to_ptr.hbm [resolvable:$true] %s305_s23 }
  0x14   : > { %1063 = dma.hbm_to_vmem [thread:$0]  (!%p1061_p10), %s306_s23, 128, %s308_s26, [#allocation6], %s1578_s28, %s1578_s28, %s1579_s29  }
  0x15   : > { %s31_s30 = ssub.s32 %s1251_s16, %s1370_s27  ;;  %s34_s11 = sadd.s32 1, %s1247_s15 }
  0x16   : > { %p32_p12 = scmp.eq.s32.totalorder %s31_s30, 0  ;;  %p41_p13 = scmp.ne.s32.totalorder %s1247_s15, %s1243_s14 }
  0x17   : > { %p42_p0 = scmp.eq.s32.totalorder %s1251_s16, 0  ;;  %p1073_p5 = scmp.lt.s32.totalorder %s1251_s16, 2 }
  0x18   : > { %s1382_s12 = scalar_select %p32_p12, %s1247_s15, %s34_s11  }
  0x19   : > { %p1386_p3 = por %p260_p2, %p41_p13  ;;  %s324_s21 = sand.u32 1, %s1247_s15  }
  0x1a   : > { %1588 = sst [smem:[#allocation13_spill]] %s1382_s12  ;;  %s1043_s22 = sshll.u32 %s1251_s16, 4 }
  0x1b   : > { %p43_p7 = por %p42_p0, %p41_p13  ;;  %s991_s25 = sshll.u32 %s324_s21, 4 }
  0x1c   : > { %s333_s23 = scalar_lea.hbm %s1566_s0, %s1043_s22  ;;  %s328_s30 = scalar_lea.vmem [#allocation2], %s991_s25 }
  0x1d   : > { %s334_s26 = sshll.u32 %s333_s23, 4  ;;  %s336_s28 = sshll.u32 %s328_s30, 4  ;;  %s335_s26 = int_to_ptr.hbm [resolvable:$true] %s334_s26  ;;  %s337_s28 = int_to_ptr.vmem [resolvable:$true] %s336_s28 }
  0x1e   : > { %p1396_p9 = pnand %p1073_p5, %p43_p7  ;;  %s325_s29 = scalar_lea.sflag [#allocation3], %s324_s21 }
  0x1f   : > { %s1151_s12 = sshra.s32 %s335_s26, 4  ;;  %s1158_s22 = scalar_lea.hbm %s1566_s0, 32  ;;  %s1152_s12 = int_to_ptr.hbm [resolvable:$true] %s1151_s12 }
  0x20   : > { %s1153_s15 = scalar_lea.hbm %s1152_s12, 16  ;;  %p1155_p10 = pneg %p1396_p9 }
  0x21   : > { %p1154_p2 = scmp.ne.s32.totalorder %s1152_s12, %s1153_s15  ;;  %p1159_p0 = scmp.lt.s32.totalorder %s1152_s12, %s1566_s0 }
  0x22   : > { %p1160_p5 = scmp.lt.s32.totalorder %s1158_s22, %s1153_s15 }
  0x23   : > { %p1156_p12 = pnand %p1155_p10, %p1154_p2 }
  0x24   : > { %p1161_p7 = por %p1160_p5, %p1159_p0 }
  0x25   : > { %p1157_p13 = pneg %p1156_p12 }
  0x27   : > { %p1162_p11 = pnand %p1161_p7, %p1157_p13 }
  0x29   : > { %1165 = shalt.err (!%p1162_p11)
}
  0x2a   : > { %s1591_s21 = smov 4   ;;  %s1592_s30 = smov 64  }
  0x2b   : > { %1067 = dma.hbm_to_vmem [thread:$0]  (!%p1396_p9), %s335_s26, 256, %s337_s28, %s325_s29, %s1592_s30, %s1592_s30, %s1591_s21  }
  0x2c   : > { %348 = sbr.rel (%p1360_p8) target bundleno = 943 (0x3af), region = 60  ;;  %s1416_s8 = sand.u32 (!%p1360_p8), 1, %s1243_s14  }
  0x2d   : > { %s995_s12 = sshll.u32 (!%p1360_p8), %s1416_s8, 4  ;;  %s351_s15 = scalar_lea.sflag (!%p1360_p8), [#allocation3], %s1416_s8 }
  0x2e   : > { %s354_s20 = scalar_lea.vmem (!%p1360_p8), [#allocation2], %s995_s12 }
  0x31   : > { %1226 = dma.done.wait (%p1347_p4), %s351_s15, 256  }
  0x32   : > { %1228 = vsyncadd (%p1347_p4), %s351_s15, 4294967040 }
  0x33   : > { %1230 = dma.done.wait (%p48_p1), [#allocation6], 128  }
  0x34   : > { %1232 = vsyncadd (%p48_p1), [#allocation6], 4294967168  ;;  %v1047_v0 = vld [vmem:[%s1567_s1 + $0x8] sm:$0xff]  ;;  %v1046_v1 = vld [vmem:[%s1567_s1] sm:$0xff]  ;;  %vm432_vm0 = vcmask 261120   ;;  %vm476_vm1 = vcmask 130048  }
  0x35   : > { %445 = vmatpush.bf16.msra.mxu0 %v1047_v0  ;;  %v1044_v2 = vld [vmem:[%s354_s20] sm:$0xff]  ;;  %v1045_v3 = vld [vmem:[%s354_s20 + $0x8] sm:$0xff]  ;;  %vm518_vm2 = vcmask 125952   ;;  %s1256_s19 = smov 16   ;;  %vm817_vm3 = vcmask 1047556   ;;  %s1259_s11 = smov 64  }
  0x36   : > { %v1048_v4 = vld [vmem:[%s1569_s3] sm:$0xff]  ;;  %v1051_v58 = vld [vmem:[#allocation5] sm:$0xff]  ;;  %s1260_s22 = smov 32   ;;  %s1261_s25 = smov 96   ;;  %vm886_vm4 = vcmask 523264   ;;  %vm888_vm5 = vcmask 785408  }
  0x37   : > { %490 = vmatpush.bf16.msra.mxu1 %v1048_v4  ;;  %v1117_v6 = vld [vmem:[%s1568_s2] ss:$0 sm:$0xff]  ;;  %s997_s23 = sshll.u32 %s1416_s8, 3  ;;  %s1040_s21 = sshll.u32 %s1338_s17, 3 }
  0x38   : > { %v1049_v20 = vld [vmem:[%s1571_s5] sm:$0xff]  ;;  %s902_s15 = scalar_lea.hbm %s1576_s10, %s1040_s21  ;;  %s396_s20 = scalar_lea.vmem [#allocation7], %s997_s23 }
  0x39   : > { %446 = vmatpush.bf16.msra.mxu0 %v1046_v1  ;;  %557 = vmatpush.bf16.msra.mxu2 %v1049_v20  ;;  %v1050_v21 = vld [vmem:[%s1572_s6] sm:$0xff]  ;;  %s904_s24 = sshll.u32 %s396_s20, 4  ;;  %s906_s28 = sshll.u32 %s902_s15, 4  ;;  %s905_s24 = int_to_ptr.vmem [resolvable:$true] %s904_s24  ;;  %s907_s28 = int_to_ptr.hbm [resolvable:$true] %s906_s28 }
  0x3a   : > { %588 = vmatpush.bf16.msra.mxu3 %v1050_v21  ;;  %v1118_v23 = vld [vmem:[%s1570_s4] ss:$0 sm:$0xff]  ;;  %s892_s17 = scalar_lea.sflag [#allocation4], %s1416_s8  ;;  %s1195_s29 = sshra.s32 %s907_s28, 4  ;;  %s1196_s29 = int_to_ptr.hbm [resolvable:$true] %s1195_s29 }
  0x3b   : > { %v1119_v0 = vld [vmem:[%s1573_s7] ss:$0 sm:$0xff]  ;;  %s1197_s26 = scalar_lea.hbm %s1196_s29, 8  ;;  %p1202_p11 = scmp.lt.s32.totalorder %s1196_s29, %s1576_s10 }
  0x3c   : > { %1014 = vmatmul.msk.bf16.vlgmr.msra.gmra.mxu0 %vm432_vm0, %v1044_v2  ;;  %p1198_p1 = scmp.ne.s32.totalorder %s1196_s29, %s1197_s26 }
  0x3e   : > { %692 = vmatpush.bf16.msrb.mxu3 %v1051_v58  ;;  %p1199_p4 = pnand %p1198_p1, %p1386_p3 }
  0x40   : > { %p1200_p8 = pneg %p1199_p4 }
  0x4c   : > { %1015 = vmatmul.msk.bf16.gmra.mxu0 %vm432_vm0, %v1045_v3 }
  0xb9   : > { %v448_v5 = vpop.f32.mrf.mxu0 }
  0xba   : > { %v449_v7 = vadd.f32 %v1117_v6, %v448_v5 }
  0xbc   : > { %v458_v10 = vmax.f32 %v449_v7, 0.0 }
  0xc1   : > { %v450_v8 = vpop.f32.mrf.mxu0 }
  0xc2   : > { %v451_v9 = vadd.f32 %v1117_v6, %v450_v8 }
  0xc4   : > { %v459_v11 = vmax.f32 %v451_v9, 0.0 }
  0xc6   : > { %v462_v12 = vpack.c.bf16 %v459_v11, %v458_v10 }
  0xc8   : > { %1020 = vmatmul.msk.bf16.vlgmr.msra.gmra.mxu1 %vm476_vm1, %v462_v12 }
  0xc9   : > { %v453_v13 = vpop.f32.mrf.mxu0 }
  0xca   : > { %v454_v14 = vadd.f32 %v1117_v6, %v453_v13 }
  0xcc   : > { %v460_v17 = vmax.f32 %v454_v14, 0.0 }
  0xd1   : > { %v455_v15 = vpop.f32.mrf.mxu0 }
  0xd2   : > { %v456_v16 = vadd.f32 %v1117_v6, %v455_v15 }
  0xd4   : > { %v461_v18 = vmax.f32 %v456_v16, 0.0 }
  0xd6   : > { %v463_v19 = vpack.c.bf16 %v461_v18, %v460_v17 }
  0xd8   : > { %1021 = vmatmul.msk.bf16.gmra.mxu1 %vm476_vm1, %v463_v19 }
 0x145   : > { %v492_v22 = vpop.f32.mrf.mxu1 }
 0x146   : > { %v493_v24 = vadd.f32 %v1118_v23, %v492_v22 }
 0x148   : > { %v502_v27 = vmax.f32 %v493_v24, 0.0 }
 0x14a   : > { %v510_v34 = vrot.slane %v502_v27, 4  ;;  %v519_v46 = vsel %vm518_vm2, %v502_v27, -inf }
 0x14c   : > { %v520_v40 = vsel %vm518_vm2, %v510_v34, -inf }
 0x14d   : > { %v494_v25 = vpop.f32.mrf.mxu1 }
 0x14e   : > { %v495_v26 = vadd.f32 %v1118_v23, %v494_v25 }
 0x150   : > { %v503_v28 = vmax.f32 %v495_v26, 0.0 }
 0x152   : > { %v534_v29 = vpack.c.bf16 %v503_v28, %v502_v27  ;;  %v511_v37 = vrot.slane %v503_v28, 4  ;;  %v521_v47 = vsel %vm518_vm2, %v503_v28, -inf }
 0x154   : > { %1026 = vmatmul.msk.bf16.vlgmr.msra.gmra.mxu2 %vm476_vm1, %v534_v29  ;;  %v522_v48 = vsel %vm518_vm2, %v511_v37, -inf }
 0x155   : > { %v497_v30 = vpop.f32.mrf.mxu1 }
 0x156   : > { %v498_v31 = vadd.f32 %v1118_v23, %v497_v30 }
 0x158   : > { %v504_v32 = vmax.f32 %v498_v31, 0.0 }
 0x15a   : > { %v512_v33 = vrot.slane %v504_v32, 4  ;;  %v523_v41 = vsel %vm518_vm2, %v504_v32, -inf }
 0x15b   : > { %v524_v50 = vmax.f32 %v519_v46, %v523_v41 }
 0x15c   : > { %v525_v38 = vsel %vm518_vm2, %v512_v33, -inf }
 0x15d   : > { %v499_v35 = vpop.f32.mrf.mxu1  ;;  %v526_v45 = vmax.f32 %v520_v40, %v525_v38 }
 0x15e   : > { %v500_v36 = vadd.f32 %v1118_v23, %v499_v35  ;;  %v1120_v35 = vld [vmem:[%s1575_s9] ss:$0 sm:$0xff] }
 0x15f   : > { %v531_v53 = vmax.f32 %v524_v50, %v526_v45 }
 0x160   : > { %v505_v39 = vmax.f32 %v500_v36, 0.0 }
 0x162   : > { %v513_v42 = vrot.slane %v505_v39, 4  ;;  %v527_v43 = vsel %vm518_vm2, %v505_v39, -inf  ;;  %v535_v44 = vpack.c.bf16 %v505_v39, %v504_v32 }
 0x163   : > { %v528_v51 = vmax.f32 %v521_v47, %v527_v43 }
 0x164   : > { %v529_v49 = vsel %vm518_vm2, %v513_v42, -inf  ;;  %1027 = vmatmul.msk.bf16.gmra.mxu2 %vm476_vm1, %v535_v44 }
 0x165   : > { %v530_v52 = vmax.f32 %v522_v48, %v529_v49 }
 0x167   : > { %v532_v54 = vmax.f32 %v528_v51, %v530_v52 }
 0x169   : > { %v533_v55 = vmax.f32 %v531_v53, %v532_v54 }
 0x16b   : > { %v569_v56 = vpack.c.bf16 %v533_v55, %v533_v55 }
 0x16d   : > { %1032 = vmatmul.msk.bf16.vlgmr.msra.gmra.mxu3 %vm476_vm1, %v569_v56 }
 0x1d7   : > { %v559_v57 = vpop.f32.mrf.mxu2 }
 0x1d8   : > { %v598_v61 = vrot.slane %v559_v57, 4 }
 0x1df   : > { %v561_v59 = vpop.f32.mrf.mxu2 }
 0x1e0   : > { %v599_v62 = vrot.slane %v561_v59, 4 }
 0x1e7   : > { %v564_v60 = vpop.f32.mrf.mxu2 }
 0x1e8   : > { %v600_v1 = vrot.slane %v564_v60, 4 }
 0x1ef   : > { %v566_v63 = vpop.f32.mrf.mxu2 }
 0x1f0   : > { %v601_v2 = vrot.slane %v566_v63, 4  ;;  %v590_v3 = vpop.f32.mrf.mxu3 }
 0x1f1   : > { %v606_v4 = vadd.f32 %v590_v3, %v559_v57  ;;  %v607_v5 = vadd.f32 %v598_v61, %v590_v3  ;;  %v608_v6 = vadd.f32 %v590_v3, %v561_v59  ;;  %v609_v7 = vadd.f32 %v599_v62, %v590_v3 }
 0x1f2   : > { %v610_v8 = vadd.f32 %v590_v3, %v564_v60  ;;  %v611_v9 = vadd.f32 %v600_v1, %v590_v3  ;;  %v612_v10 = vadd.f32 %v590_v3, %v566_v63  ;;  %v613_v11 = vadd.f32 %v601_v2, %v590_v3 }
 0x1f3   : > { %v618_v12 = vadd.f32 %v1119_v0, %v606_v4  ;;  %v619_v13 = vadd.f32 %v1119_v0, %v607_v5  ;;  %v620_v14 = vadd.f32 %v1119_v0, %v608_v6  ;;  %v621_v15 = vadd.f32 %v1119_v0, %v609_v7 }
 0x1f4   : > { %v622_v16 = vadd.f32 %v1119_v0, %v610_v8  ;;  %v623_v17 = vadd.f32 %v1119_v0, %v611_v9  ;;  %v624_v18 = vadd.f32 %v1119_v0, %v612_v10  ;;  %v625_v22 = vadd.f32 %v1119_v0, %v613_v11 }
 0x1f5   : > { %v626_v19 = vmax.f32 %v618_v12, 0.0  ;;  %v627_v20 = vmax.f32 %v619_v13, 0.0  ;;  %v628_v21 = vmax.f32 %v620_v14, 0.0  ;;  %v629_v23 = vmax.f32 %v621_v15, 0.0 }
 0x1f6   : > { %v630_v24 = vmax.f32 %v622_v16, 0.0  ;;  %v631_v25 = vmax.f32 %v623_v17, 0.0  ;;  %v632_v27 = vmax.f32 %v624_v18, 0.0  ;;  %v633_v28 = vmax.f32 %v625_v22, 0.0 }
 0x1f7   : > { %642 = vst [vmem:[#allocation1] ss:$2 sm:$0xff] %v626_v19 }
 0x1f8   : > { %644 = vst [vmem:[#allocation1 + $0x1] ss:$2 sm:$0xff] %v627_v20  ;;  %v592_v26 = vpop.f32.mrf.mxu3 }
 0x1f9   : > { %646 = vst [vmem:[#allocation1 + $0x10] ss:$2 sm:$0xff] %v628_v21 }
 0x1fa   : > { %648 = vst [vmem:[#allocation1 + $0x11] ss:$2 sm:$0xff] %v629_v23 }
 0x1fb   : > { %650 = vst [vmem:[#allocation1 + $0x20] ss:$2 sm:$0xff] %v630_v24 }
 0x1fc   : > { %652 = vst [vmem:[#allocation1 + $0x21] ss:$2 sm:$0xff] %v631_v25 }
 0x1fd   : > { %654 = vst [vmem:[#allocation1 + $0x30] ss:$2 sm:$0xff] %v632_v27 }
 0x1fe   : > { %656 = vst [vmem:[#allocation1 + $0x31] ss:$2 sm:$0xff] %v633_v28 }
 0x1ff   : > { %v657_v29 = vld.sshfl [vmem:[#allocation1] sm:$0xff pattern:$0x75316420] }
 0x201   : > { %v658_v30 = vld.sshfl [vmem:[#allocation1 + $0x10] sm:$0xff pattern:$0x75316420] }
 0x202   : > { %v665_v31 = vpack.c.bf16 %v658_v30, %v657_v29 }
 0x203   : > { %v659_v32 = vld.sshfl [vmem:[#allocation1 + $0x20] sm:$0xff pattern:$0x75316420] }
 0x204   : > { %1037 = vmatmul.msk.bf16.vlgmr.msrb.gmra.mxu3 %vm476_vm1, %v665_v31 }
 0x205   : > { %v660_v33 = vld.sshfl [vmem:[#allocation1 + $0x30] sm:$0xff pattern:$0x75316420] }
 0x206   : > { %v666_v34 = vpack.c.bf16 %v660_v33, %v659_v32 }
 0x214   : > { %1038 = vmatmul.msk.bf16.gmra.mxu3 %vm476_vm1, %v666_v34 }
 0x287   : > { %v694_v36 = vpop.f32.mrf.mxu3 }
 0x288   : > { %v695_v37 = vadd.f32 %v1120_v35, %v694_v36 }
 0x28a   : > { %v1472_v38 = vmax.f32 %v695_v37, 0.0 }
 0x28c   : > { %v712_v39 = vrot.slane %v1472_v38, 4  ;;  %v720_v6 = vsel %vm518_vm2, %v1472_v38, -inf }
 0x28d   : > { %v721_v13 = vrot.slane %v720_v6, 4 }
 0x28e   : > { %v727_v40 = vsel %vm518_vm2, %v712_v39, -inf }
 0x28f   : > { %v696_v41 = vpop.f32.mrf.mxu3  ;;  %v728_v42 = vrot.slane %v727_v40, 4  ;;  %v722_v21 = vmax.f32 %v720_v6, %v721_v13 }
 0x290   : > { %v697_v43 = vadd.f32 %v1120_v35, %v696_v41 }
 0x291   : > { %v729_v44 = vmax.f32 %v727_v40, %v728_v42  ;;  %v723_v31 = vrot.slane %v722_v21, 2 }
 0x292   : > { %v1478_v45 = vmax.f32 %v697_v43, 0.0 }
 0x293   : > { %v730_v46 = vrot.slane %v729_v44, 2  ;;  %v724_v37 = vmax.f32 %v722_v21, %v723_v31 }
 0x294   : > { %v713_v47 = vrot.slane %v1478_v45, 4  ;;  %v734_v48 = vsel %vm518_vm2, %v1478_v45, -inf }
 0x295   : > { %v735_v49 = vrot.slane %v734_v48, 4  ;;  %v731_v50 = vmax.f32 %v729_v44, %v730_v46  ;;  %v725_v42 = vrot.slane %v724_v37, 1 }
 0x296   : > { %v741_v51 = vsel %vm518_vm2, %v713_v47, -inf }
 0x297   : > { %v736_v52 = vmax.f32 %v734_v48, %v735_v49  ;;  %v699_v53 = vpop.f32.mrf.mxu3  ;;  %v732_v54 = vrot.slane %v731_v50, 1  ;;  %v742_v55 = vrot.slane %v741_v51, 4  ;;  %v726_v44 = vmax.f32 %v724_v37, %v725_v42 }
 0x298   : > { %v700_v56 = vadd.f32 %v1120_v35, %v699_v53  ;;  %v1257_v53 = vmov 1983009808  }
 0x299   : > { %v733_v57 = vmax.f32 %v731_v50, %v732_v54  ;;  %v743_v58 = vmax.f32 %v741_v51, %v742_v55  ;;  %v737_v59 = vrot.slane %v736_v52, 2  ;;  %v820_v54 = vunpack.c.l.s4 %v1257_v53 }
 0x29a   : > { %v1486_v60 = vmax.f32 %v700_v56, 0.0 }
 0x29b   : > { %786 = vrot.lane.b32.xlu1 %v733_v57, %s1256_s19  ;;  %v744_v61 = vrot.slane %v743_v58, 2  ;;  %v738_v62 = vmax.f32 %v736_v52, %v737_v59 }
 0x29c   : > { %v714_v63 = vrot.slane %v1486_v60, 4  ;;  %v748_v11 = vsel %vm518_vm2, %v1486_v60, -inf }
 0x29d   : > { %v745_v0 = vmax.f32 %v743_v58, %v744_v61  ;;  %v739_v1 = vrot.slane %v738_v62, 1  ;;  %v749_v17 = vrot.slane %v748_v11, 4  ;;  %v821_v61 = vunpack.c.0.s8 %v820_v54 }
 0x29e   : > { %v755_v2 = vsel %vm518_vm2, %v714_v63, -inf }
 0x29f   : > { %v756_v3 = vrot.slane %v755_v2, 4  ;;  %v701_v4 = vpop.f32.mrf.mxu3  ;;  %v746_v5 = vrot.slane %v745_v0, 1  ;;  %v740_v9 = vmax.f32 %v738_v62, %v739_v1  ;;  %v750_v25 = vmax.f32 %v748_v11, %v749_v17 }
 0x2a0   : > { %v702_v7 = vadd.f32 %v1120_v35, %v701_v4 }
 0x2a1   : > { %v747_v8 = vmax.f32 %v745_v0, %v746_v5  ;;  %v757_v10 = vmax.f32 %v755_v2, %v756_v3  ;;  %v751_v34 = vrot.slane %v750_v25, 2  ;;  %v1258_v5 = vmov 1934713408  }
 0x2a2   : > { %v707_v12 = vmax.f32 %v702_v7, 0.0  ;;  %v846_v6 = vunpack.c.l.s4 %v1258_v5 }
 0x2a3   : > { %790 = vrot.lane.b32.xlu0 %v747_v8, %s1256_s19  ;;  %788 = vrot.lane.b32.xlu1 %v740_v9, %s1256_s19  ;;  %v758_v14 = vrot.slane %v757_v10, 2  ;;  %v752_v41 = vmax.f32 %v750_v25, %v751_v34 }
 0x2a4   : > { %v715_v15 = vrot.slane %v707_v12, 4  ;;  %v762_v16 = vsel %vm518_vm2, %v707_v12, -inf }
 0x2a5   : > { %v763_v18 = vrot.slane %v762_v16, 4  ;;  %v759_v19 = vmax.f32 %v757_v10, %v758_v14  ;;  %v753_v43 = vrot.slane %v752_v41, 1 }
 0x2a6   : > { %v769_v20 = vsel %vm518_vm2, %v715_v15, -inf }
 0x2a7   : > { %v764_v22 = vmax.f32 %v762_v16, %v763_v18  ;;  %v760_v23 = vrot.slane %v759_v19, 1  ;;  %v770_v24 = vrot.slane %v769_v20, 4  ;;  %v754_v46 = vmax.f32 %v752_v41, %v753_v43 }
 0x2a9   : > { %v761_v26 = vmax.f32 %v759_v19, %v760_v23  ;;  %v765_v27 = vrot.slane %v764_v22, 2  ;;  %v771_v28 = vmax.f32 %v769_v20, %v770_v24 }
 0x2ab   : > { %794 = vrot.lane.b32.xlu1 %v761_v26, %s1256_s19  ;;  %v766_v29 = vmax.f32 %v764_v22, %v765_v27  ;;  %v772_v30 = vrot.slane %v771_v28, 2 }
 0x2ad   : > { %v767_v32 = vrot.slane %v766_v29, 1  ;;  %v773_v33 = vmax.f32 %v771_v28, %v772_v30 }
 0x2af   : > { %v768_v35 = vmax.f32 %v766_v29, %v767_v32  ;;  %v774_v36 = vrot.slane %v773_v33, 1 }
 0x2b1   : > { %796 = vrot.lane.b32.xlu0 %v768_v35, %s1256_s19  ;;  %v775_v40 = vmax.f32 %v773_v33, %v774_v36 }
 0x2b3   : > { %798 = vrot.lane.b32.xlu2 %v775_v40, %s1256_s19 }
 0x2b9   : > { %784 = vrot.lane.b32.xlu0 %v726_v44, %s1256_s19 }
 0x2bb   : > { %792 = vrot.lane.b32.xlu2 %v754_v46, %s1256_s19 }
 0x30d   : > { %v787_v48 = vpop.permute.xlu1 %786  ;;  %v799_v50 = vpop.permute.xlu2 %798 }
 0x30e   : > { %v815_v52 = vsel %vm476_vm1, %v715_v15, %v799_v50 }
 0x30f   : > { %v835_v56 = vrot.slane %v815_v52, 4 }
 0x315   : > { %v789_v49 = vpop.permute.xlu1 %788  ;;  %v791_v51 = vpop.permute.xlu0 %790 }
 0x316   : > { %v811_v58 = vsel %vm476_vm1, %v713_v47, %v791_v51  ;;  %v793_v62 = vpop.permute.xlu2 %792  ;;  %v810_v9 = vsel %vm476_vm1, %v1478_v45, %v789_v49 }
 0x317   : > { %v823_v0 = vrot.slane %v811_v58, 4  ;;  %v812_v7 = vsel %vm476_vm1, %v1486_v60, %v793_v62  ;;  %v816_v16 = vrot.slane %v810_v9, 4 }
 0x31d   : > { %v795_v55 = vpop.permute.xlu1 %794 }
 0x31e   : > { %v813_v57 = vsel %vm476_vm1, %v714_v63, %v795_v55  ;;  %v809_v63 = vsel %vm476_vm1, %v712_v39, %v787_v48 }
 0x31f   : > { %v836_v59 = vsel %vm817_vm3, %v835_v56, %v813_v57  ;;  %v824_v47 = vsel %vm817_vm3, %v823_v0, %v809_v63 }
 0x320   : > { %v840_v2 = vperm.slane %v836_v59, %v821_v61  ;;  %v828_v13 = vperm.slane %v824_v47, %v821_v61 }
 0x322   : > { %v853_v10 = vrot.slane %v840_v2, 4  ;;  %v841_v20 = vrot.slane %v828_v13, 4 }
 0x323   : > { %v797_v1 = vpop.permute.xlu0 %796 }
 0x324   : > { %v814_v3 = vsel %vm476_vm1, %v707_v12, %v797_v1  ;;  %v847_v12 = vunpack.c.0.s8 %v846_v6 }
 0x325   : > { %v829_v4 = vrot.slane %v814_v3, 4 }
 0x327   : > { %v830_v8 = vsel %vm817_vm3, %v829_v4, %v812_v7 }
 0x328   : > { %v834_v11 = vperm.slane %v830_v8, %v821_v61 }
 0x32a   : > { %v855_v14 = vrot.slane %v834_v11, 4  ;;  %v854_v15 = vsel %vm817_vm3, %v853_v10, %v834_v11 }
 0x32b   : > { %v785_v17 = vpop.permute.xlu0 %784  ;;  %v860_v19 = vperm.slane %v854_v15, %v847_v12 }
 0x32c   : > { %v808_v39 = vsel %vm476_vm1, %v1472_v38, %v785_v17  ;;  %v856_v60 = vsel %vm817_vm3, %v840_v2, %v855_v14 }
 0x32d   : > { %v818_v18 = vsel %vm817_vm3, %v816_v16, %v808_v39  ;;  %v864_v45 = vperm.slane %v856_v60, %v847_v12  ;;  %v865_v25 = vrot.slane %v860_v19, 4 }
 0x32e   : > { %v822_v21 = vperm.slane %v818_v18, %v821_v61 }
 0x32f   : > { %v869_v28 = vrot.slane %v864_v45, 4 }
 0x330   : > { %v843_v22 = vrot.slane %v822_v21, 4  ;;  %v842_v23 = vsel %vm817_vm3, %v841_v20, %v822_v21 }
 0x331   : > { %v848_v24 = vperm.slane %v842_v23, %v847_v12 }
 0x332   : > { %v844_v26 = vsel %vm817_vm3, %v828_v13, %v843_v22 }
 0x333   : > { %v852_v27 = vperm.slane %v844_v26, %v847_v12  ;;  %v867_v38 = vrot.slane %v848_v24, 4  ;;  %v866_v29 = vsel %vm817_vm3, %v865_v25, %v848_v24 }
 0x335   : > { %v870_v30 = vsel %vm817_vm3, %v869_v28, %v852_v27  ;;  %v868_v31 = vsel %vm817_vm3, %v860_v19, %v867_v38  ;;  %v871_v32 = vrot.slane %v852_v27, 4 }
 0x336   : > { %878 = vrot.lane.b32.xlu0 %v870_v30, %s1259_s11  ;;  %874 = vrot.lane.b32.xlu2 %v868_v31, %s1260_s22  ;;  %s1201_s22 = scalar_lea.hbm %s1576_s10, 16 }
 0x337   : > { %v872_v33 = vsel %vm817_vm3, %v864_v45, %v871_v32  ;;  %p1203_p9 = scmp.lt.s32.totalorder %s1201_s22, %s1197_s26 }
 0x338   : > { %882 = vrot.lane.b32.xlu1 %v872_v33, %s1261_s25 }
 0x339   : > { %p1204_p2 = por %p1203_p9, %p1202_p11 }
 0x33b   : > { %p1205_p10 = pnand %p1204_p2, %p1200_p8 }
 0x390   : > { %v875_v34 = vpop.permute.xlu2 %874 }
 0x391   : > { %v885_v35 = vsel %vm432_vm0, %v866_v29, %v875_v34 }
 0x3a8   : > { %v879_v36 = vpop.permute.xlu0 %878 }
 0x3a9   : > { %v887_v37 = vsel %vm886_vm4, %v885_v35, %v879_v36 }
 0x3aa   : > { %v883_v40 = vpop.permute.xlu1 %882 }
 0x3ab   : > { %v889_v41 = vsel %vm888_vm5, %v887_v37, %v883_v40 }
 0x3ac   : > { %890 = vst [vmem:[%s396_s20] sm:$0xff] %v889_v41 }
 0x3ad   : > { %1208 = shalt.err (!%p1205_p10)
}
 0x3ae   : > { %1058 = dma.vmem_to_hbm [thread:$0]  (%p1386_p3), %s905_s24, 128, %s907_s28, %s892_s17  }
 0x3af PF: > { %s918_s21 = sand.u32 1, %s1239_s13   ;;  %p1594_p12 = scmp.ge.s32.totalorder %s1251_s16, 2 }
 0x3b0   : > { %s919_s30 = scalar_lea.sflag [#allocation4], %s918_s21 }
 0x3b1   : > { %p1069_p13 = pnand %p1594_p12, %p1352_p6 }
 0x3b3   : > { %p1070_p0 = pneg %p1069_p13 }
 0x3b5   : > { %1234 = dma.done.wait (%p1070_p0), %s919_s30, 128  }
 0x3b6   : > { %1236 = vsyncadd (%p1070_p0), %s919_s30, 4294967168  ;;  %s1595_s12 = sld [smem:[#allocation11_spill]]  ;;  %p24_p5 = scmp.ge.s32.totalorder %s1370_s27, 4  }
 0x3b7   : > { %s1596_s15 = sld [smem:[#allocation13_spill]]  ;;  %s1597_s13 = smov %s1243_s14 }
 0x3b8   : > { %s1599_s16 = smov %s1370_s27  ;;  %26 = sbr.rel (!%p24_p5) target bundleno = 8 (0x8), region = 116 }
 0x3bc   : > { %s1598_s14 = smov %s1595_s12 }
 0x3bd   :  { %925 = vsyncpa [#allocation3], 1 }
 0x3be   :  { %927 = vsyncpa [#allocation3 + $0x1], 1 }
 0x3bf   :  { %928 = vsyncpa [#allocation6], 1 }
 0x3c0   :  { %929 = vsyncpa [#allocation4], 1 }
 0x3c1   :  { %931 = vsyncpa [#allocation4 + $0x1], 1 }

</bundles_post_ra>
